<compile_context>
chip_gen: v7x
topology: tpu7x:2x2x1
jax: 0.10.0
libtpu: 0.0.40
codegen_flags: <defaults>
</compile_context>

<pallas_src>
import functools

import numpy as np
import jax
import jax.numpy as jnp
from jax.experimental import pallas as pl
from jax.experimental.pallas import tpu as pltpu

WIN_SIZE = 11
WIN_SIGMA = 1.5
K1, K2 = 0.01, 0.03
DATA_RANGE = 1.0
C1 = (K1 * DATA_RANGE) ** 2
C2 = (K2 * DATA_RANGE) ** 2

_MAX_MAPS_PER_STEP = 8   # cap on (batch*channel) maps processed per grid step
# Band tile widths for the tiled filter matmuls (lane-aligned).  128 would
# match v5e's 128x128 MXU K granularity slightly better; 256 is a good
# compromise across v5e/v6e/v7x.
_COL_TILE = 256
_ROW_TILE = 256


def _gaussian_window(win_size, sigma):
    coords = np.arange(win_size, dtype=np.float64) - win_size // 2
    g = np.exp(-(coords ** 2) / (2.0 * sigma ** 2))
    g /= g.sum()
    return g.astype(np.float32)


_WIN = _gaussian_window(WIN_SIZE, WIN_SIGMA)  # (11,), deterministic constant


def _band_matrices(h, w):
    """Banded matrices so the separable VALID Gaussian filter is matmuls.

    bw: (W, w_out) with bw[j + k, j] = win[k]   -> horizontal pass: img @ bw
    bh: (h_out, H) with bh[i, i + k] = win[k]   -> vertical pass:   bh @ acc
    Only an 11-wide band is nonzero; the kernel contracts band slices only.
    """
    h_out = h - WIN_SIZE + 1
    w_out = w - WIN_SIZE + 1
    bw = np.zeros((w, w_out), np.float32)
    bh = np.zeros((h_out, h), np.float32)
    cols = np.arange(w_out)
    rows = np.arange(h_out)
    for k in range(WIN_SIZE):
        bw[cols + k, cols] = _WIN[k]
        bh[rows, rows + k] = _WIN[k]
    return jnp.asarray(bw), jnp.asarray(bh)


def _ssim_partial_kernel(x_ref, y_ref, bw_ref, bh_ref, out_ref, *,
                         block_b, h, w, h_out, w_out):
    """One grid step: `block_b` channel maps -> one (8,128) partial-sum tile."""
    bw = bw_ref[...]                        # (W, w_out) f32
    bh = bh_ref[...]                        # (h_out, H) f32

    # f32 working copies, flattened so the horizontal matmul batches all maps
    # along M (fills the MXU even for small H, W).
    # TODO(synk): bf16 callers could feed x/y unconverted to the mu1/mu2
    # passes (bf16 MXU path) while keeping squared/cross products in f32.
    x = x_ref[...].astype(jnp.float32).reshape(block_b * h, w)
    y = y_ref[...].astype(jnp.float32).reshape(block_b * h, w)

    # Vertical-pass band tiles: slice the 11-wide band of bh and broadcast it
    # across maps ONCE (hoisted out of the 5 filt() calls).
    v_tiles = []
    for r0 in range(0, h_out, _ROW_TILE):
        th = min(_ROW_TILE, h_out - r0)
        k0, k1 = r0, min(r0 + th + WIN_SIZE - 1, h)
        bh_t = jnp.broadcast_to(bh[r0:r0 + th, k0:k1], (block_b, th, k1 - k0))
        v_tiles.append((k0, k1, bh_t))

    def hpass(img):
        # (block_b*H, W) f32 -> (block_b, H, w_out); banded/tiled MXU matmuls.
        parts = []
        for c0 in range(0, w_out, _COL_TILE):
            tw = min(_COL_TILE, w_out - c0)
            k0, k1 = c0, c0 + tw + WIN_SIZE - 1     # 11-wide band for this tile
            parts.append(jnp.dot(img[:, k0:k1], bw[k0:k1, c0:c0 + tw],
                                 preferred_element_type=jnp.float32))
        acc = parts[0] if len(parts) == 1 else jnp.concatenate(parts, axis=1)
        return acc.reshape(block_b, h, w_out)

    def vpass(acc):
        # (block_b, H, w_out) -> (block_b, h_out, w_out); batched over maps.
        parts = []
        for (k0, k1, bh_t) in v_tiles:
            parts.append(jnp.einsum('boh,bhw->bow', bh_t, acc[:, k0:k1, :],
                                    preferred_element_type=jnp.float32))
        return parts[0] if len(parts) == 1 else jnp.concatenate(parts, axis=1)

    def filt(img):
        return vpass(hpass(img))

    mu1 = filt(x)
    mu2 = filt(y)
    e_xx = filt(x * x)
    e_yy = filt(y * y)
    e_xy = filt(x * y)

    mu1_sq = mu1 * mu1
    mu2_sq = mu2 * mu2
    mu1_mu2 = mu1 * mu2
    sigma1_sq = e_xx - mu1_sq
    sigma2_sq = e_yy - mu2_sq
    sigma12 = e_xy - mu1_mu2

    num = (2.0 * mu1_mu2 + C1) * (2.0 * sigma12 + C2)
    den = (mu1_sq + mu2_sq + C1) * (sigma1_sq + sigma2_sq + C2)
    # den >= C1*C2 > 0; approx reciprocal runs on the otherwise-idle EUP slot.
    ssim_map = num * pl.reciprocal(den, approx=True)

    out_ref[...] = jnp.full(out_ref.shape, jnp.sum(ssim_map), jnp.float32)


def _vmem_limit_bytes():
    try:
        phys = pltpu.get_tpu_info().vmem_capacity_bytes
    except Exception:
        phys = 64 * 1024 * 1024          # conservative (v7x per-core VMEM)
    # ~75% of physical, capped: ~48 MiB on v7x, ~96 MiB on v5e/v6e.
    return int(min(phys * 3 // 4, 96 * 1024 * 1024))


def _vmem_bytes_per_map(h, w, h_out, w_out, in_itemsize):
    """Per-map VMEM consumers of one grid step (real consumers, not just IO)."""
    io = 2 * 2 * h * w * in_itemsize          # x,y input blocks, double-buffered
    casts = 3 * h * w * 4                     # x,y f32 casts + one product temp
    acc_h = h * w_out * 4                     # horizontal-pass accumulator
    bh_bcast = min(h_out, _ROW_TILE) * min(h, _ROW_TILE + WIN_SIZE - 1) * 4
    outs = 9 * h_out * w_out * 4              # 5 filtered maps + epilogue temps
    return io + casts + acc_h + bh_bcast + outs


def ssim_loss(x, y):
    """1 - SSIM(x, y). x, y: NCHW arrays (any float dtype) with H, W >= 11."""
    assert x.shape == y.shape and x.ndim == 4
    n, c, h, w = x.shape
    assert h >= WIN_SIZE and w >= WIN_SIZE
    h_out = h - WIN_SIZE + 1
    w_out = w - WIN_SIZE + 1
    nc = n * c

    # Keep the caller's dtype; the f32 cast happens inside the kernel.
    xf = x.reshape(nc, h, w)
    yf = y.reshape(nc, h, w)
    bw, bh = _band_matrices(h, w)

    vmem_limit = _vmem_limit_bytes()
    fixed = 2 * 2 * 4 * (w * w_out + h_out * h)        # double-buffered bw/bh
    per_map = _vmem_bytes_per_map(h, w, h_out, w_out, jnp.dtype(x.dtype).itemsize)
    budget = max(vmem_limit - fixed, per_map)
    block_b = int(max(1, min(nc, _MAX_MAPS_PER_STEP, budget // per_map)))
    # Keep >= 2 grid steps so a v7x megacore can split the "parallel" grid
    # across its two TensorCores; step overhead (~0.35 us) is negligible.
    if nc >= 2:
        block_b = min(block_b, -(-nc // 2))
    num_steps = -(-nc // block_b)
    nc_pad = num_steps * block_b
    if nc_pad != nc:
        # Padding must be exactly zero: a zero map yields ssim_map == 1
        # everywhere, which is subtracted exactly in the wrapper below.
        pad = ((0, nc_pad - nc), (0, 0), (0, 0))
        xf = jnp.pad(xf, pad)
        yf = jnp.pad(yf, pad)

    # TODO(synk): for very large maps (>= ~1024^2 on v7x's 64 MiB VMEM) add
    # row-tiling of each map with a (WIN_SIZE-1) halo instead of whole maps.

    kernel = functools.partial(_ssim_partial_kernel, block_b=block_b,
                               h=h, w=w, h_out=h_out, w_out=w_out)

    partials = pl.pallas_call(
        kernel,
        out_shape=jax.ShapeDtypeStruct((num_steps, 8, 128), jnp.float32),
        grid_spec=pltpu.PrefetchScalarGridSpec(
            num_scalar_prefetch=0,
            grid=(num_steps,),
            in_specs=[
                pl.BlockSpec((block_b, h, w), lambda i: (i, 0, 0)),
                pl.BlockSpec((block_b, h, w), lambda i: (i, 0, 0)),
                # bw/bh are grid-invariant: the same block index is reused, so
                # they are DMA'd once (only the 2x buffer allocation remains).
                pl.BlockSpec((w, w_out), lambda i: (0, 0)),
                pl.BlockSpec((h_out, h), lambda i: (0, 0)),
            ],
            out_specs=pl.BlockSpec((1, 8, 128), lambda i: (i, 0, 0)),
        ),
        compiler_params=pltpu.CompilerParams(
            dimension_semantics=("parallel",),   # disjoint per-step outputs
            vmem_limit_bytes=vmem_limit,
        ),
    )(xf, yf, bw, bh)

    total = jnp.sum(partials[:, 0, 0])
    # Remove the contribution of zero-padded tail maps (ssim_map == 1/pixel).
    total = total - jnp.float32((nc_pad - nc) * h_out * w_out)
    mean_ssim = total / jnp.float32(nc * h_out * w_out)
    return (jnp.float32(1.0) - mean_ssim).astype(jnp.float32)


def _ssim_loss_ref(x, y):
    """Pure-JAX reference (Gaussian VALID conv, same math) for correctness."""
    n, c, h, w = x.shape
    win = jnp.asarray(_WIN, jnp.float32)
    k2d = win[:, None] * win[None, :]
    kern = jnp.broadcast_to(k2d, (n * c, 1, WIN_SIZE, WIN_SIZE))

    def filt(img):
        img = img.reshape(1, n * c, h, w)
        out = jax.lax.conv_general_dilated(
            img, kern, window_strides=(1, 1), padding="VALID",
            feature_group_count=n * c,
            dimension_numbers=("NCHW", "OIHW", "NCHW"))
        return out[0]

    xf = x.reshape(n * c, h, w).astype(jnp.float32)
    yf = y.reshape(n * c, h, w).astype(jnp.float32)
    mu1, mu2 = filt(xf), filt(yf)
    s1 = filt(xf * xf) - mu1 * mu1
    s2 = filt(yf * yf) - mu2 * mu2
    s12 = filt(xf * yf) - mu1 * mu2
    ssim_map = ((2 * mu1 * mu2 + C1) * (2 * s12 + C2)) / (
        (mu1 * mu1 + mu2 * mu2 + C1) * (s1 + s2 + C2))
    return 1.0 - jnp.mean(ssim_map)


if __name__ == "__main__":
    key = jax.random.PRNGKey(0)
    kx, ky = jax.random.split(key)
    # SSIM expects values in [0, data_range] = [0, 1]
    x = jax.random.uniform(kx, (2, 4, 16, 16), dtype=jnp.float32)
    y = jnp.clip(x + 0.05 * jax.random.normal(ky, (2, 4, 16, 16), jnp.float32),
                 0.0, 1.0)

    loss = jax.block_until_ready(ssim_loss(x, y))
    ref = jax.block_until_ready(_ssim_loss_ref(x, y))
    assert loss.shape == () and loss.dtype == jnp.float32
    # Tolerance is bounded by the in-kernel EUP approx reciprocal (~1e-4 rel);
    # agreement with the exact-divide conv reference is typically ~1e-5.
    np.testing.assert_allclose(np.asarray(loss), np.asarray(ref),
                               rtol=2e-3, atol=2e-3)
    print("KERNEL_OK")
</pallas_src>

<mosaic_0001>
module attributes {stable_mosaic.version = 11 : i64} {
  func.func @_ssim_partial_kernel(%arg0: i32, %arg1: memref<4x16x16xf32, #tpu.memory_space<vmem>>, %arg2: memref<4x16x16xf32, #tpu.memory_space<vmem>>, %arg3: memref<16x6xf32, #tpu.memory_space<vmem>>, %arg4: memref<6x16xf32, #tpu.memory_space<vmem>>, %arg5: memref<1x8x128xf32, #tpu.memory_space<vmem>>) attributes {dimension_semantics = [#tpu.dimension_semantics<parallel>], iteration_bounds = array<i64: 2>, scalar_prefetch = 0 : i64, scratch_operands = 0 : i64, tpu.core_type = #tpu.core_type<tc>, window_params = [{transform_indices = @transform_0, window_bounds = array<i64: 4, 16, 16>}, {transform_indices = @transform_1, window_bounds = array<i64: 4, 16, 16>}, {pipeline_mode = #tpu.pipeline_mode<synchronous>, transform_indices = @transform_2, window_bounds = array<i64: 16, 6>}, {pipeline_mode = #tpu.pipeline_mode<synchronous>, transform_indices = @transform_3, window_bounds = array<i64: 6, 16>}, {transform_indices = @transform_4, window_bounds = array<i64: 1, 8, 128>}]} {
    %c0 = arith.constant 0 : index
    %c0_0 = arith.constant 0 : index
    %0 = vector.load %arg3[%c0, %c0_0] : memref<16x6xf32, #tpu.memory_space<vmem>>, vector<16x6xf32>
    %c0_1 = arith.constant 0 : index
    %c0_2 = arith.constant 0 : index
    %1 = vector.load %arg4[%c0_1, %c0_2] : memref<6x16xf32, #tpu.memory_space<vmem>>, vector<6x16xf32>
    %c0_3 = arith.constant 0 : index
    %c0_4 = arith.constant 0 : index
    %c0_5 = arith.constant 0 : index
    %2 = vector.load %arg1[%c0_3, %c0_4, %c0_5] : memref<4x16x16xf32, #tpu.memory_space<vmem>>, vector<4x16x16xf32>
    %3 = vector.shape_cast %2 : vector<4x16x16xf32> to vector<64x16xf32>
    %c0_6 = arith.constant 0 : index
    %c0_7 = arith.constant 0 : index
    %c0_8 = arith.constant 0 : index
    %4 = vector.load %arg2[%c0_6, %c0_7, %c0_8] : memref<4x16x16xf32, #tpu.memory_space<vmem>>, vector<4x16x16xf32>
    %5 = vector.shape_cast %4 : vector<4x16x16xf32> to vector<64x16xf32>
    %6 = vector.shape_cast %1 : vector<6x16xf32> to vector<1x6x16xf32>
    %7 = vector.broadcast %6 : vector<1x6x16xf32> to vector<4x6x16xf32>
    %cst = arith.constant dense<0.000000e+00> : vector<64x6xf32>
    %8 = tpu.matmul %3, %0, %cst {dimension_numbers = #tpu.dot_dimension_numbers<[1], [0], [0], [1], [0, 0, 1, 1], [], []>} : vector<64x16xf32>, vector<16x6xf32>, vector<64x6xf32> -> vector<64x6xf32>
    %9 = vector.shape_cast %8 : vector<64x6xf32> to vector<4x16x6xf32>
    "tpu.trace_start"() <{level = 10 : i32, message = "boh,bhw->bow"}> : () -> ()
    %cst_9 = arith.constant dense<0.000000e+00> : vector<4x6x6xf32>
    %10 = tpu.matmul %7, %9, %cst_9 {dimension_numbers = #tpu.dot_dimension_numbers<[2], [1], [1], [2], [0, 0, 0, 1, 1, 2], [0], [0]>} : vector<4x6x16xf32>, vector<4x16x6xf32>, vector<4x6x6xf32> -> vector<4x6x6xf32>
    "tpu.trace_stop"() : () -> ()
    %cst_10 = arith.constant dense<0.000000e+00> : vector<64x6xf32>
    %11 = tpu.matmul %5, %0, %cst_10 {dimension_numbers = #tpu.dot_dimension_numbers<[1], [0], [0], [1], [0, 0, 1, 1], [], []>} : vector<64x16xf32>, vector<16x6xf32>, vector<64x6xf32> -> vector<64x6xf32>
    %12 = vector.shape_cast %11 : vector<64x6xf32> to vector<4x16x6xf32>
    "tpu.trace_start"() <{level = 10 : i32, message = "boh,bhw->bow"}> : () -> ()
    %cst_11 = arith.constant dense<0.000000e+00> : vector<4x6x6xf32>
    %13 = tpu.matmul %7, %12, %cst_11 {dimension_numbers = #tpu.dot_dimension_numbers<[2], [1], [1], [2], [0, 0, 0, 1, 1, 2], [0], [0]>} : vector<4x6x16xf32>, vector<4x16x6xf32>, vector<4x6x6xf32> -> vector<4x6x6xf32>
    "tpu.trace_stop"() : () -> ()
    %14 = arith.mulf %3, %3 : vector<64x16xf32>
    %cst_12 = arith.constant dense<0.000000e+00> : vector<64x6xf32>
    %15 = tpu.matmul %14, %0, %cst_12 {dimension_numbers = #tpu.dot_dimension_numbers<[1], [0], [0], [1], [0, 0, 1, 1], [], []>} : vector<64x16xf32>, vector<16x6xf32>, vector<64x6xf32> -> vector<64x6xf32>
    %16 = vector.shape_cast %15 : vector<64x6xf32> to vector<4x16x6xf32>
    "tpu.trace_start"() <{level = 10 : i32, message = "boh,bhw->bow"}> : () -> ()
    %cst_13 = arith.constant dense<0.000000e+00> : vector<4x6x6xf32>
    %17 = tpu.matmul %7, %16, %cst_13 {dimension_numbers = #tpu.dot_dimension_numbers<[2], [1], [1], [2], [0, 0, 0, 1, 1, 2], [0], [0]>} : vector<4x6x16xf32>, vector<4x16x6xf32>, vector<4x6x6xf32> -> vector<4x6x6xf32>
    "tpu.trace_stop"() : () -> ()
    %18 = arith.mulf %5, %5 : vector<64x16xf32>
    %cst_14 = arith.constant dense<0.000000e+00> : vector<64x6xf32>
    %19 = tpu.matmul %18, %0, %cst_14 {dimension_numbers = #tpu.dot_dimension_numbers<[1], [0], [0], [1], [0, 0, 1, 1], [], []>} : vector<64x16xf32>, vector<16x6xf32>, vector<64x6xf32> -> vector<64x6xf32>
    %20 = vector.shape_cast %19 : vector<64x6xf32> to vector<4x16x6xf32>
    "tpu.trace_start"() <{level = 10 : i32, message = "boh,bhw->bow"}> : () -> ()
    %cst_15 = arith.constant dense<0.000000e+00> : vector<4x6x6xf32>
    %21 = tpu.matmul %7, %20, %cst_15 {dimension_numbers = #tpu.dot_dimension_numbers<[2], [1], [1], [2], [0, 0, 0, 1, 1, 2], [0], [0]>} : vector<4x6x16xf32>, vector<4x16x6xf32>, vector<4x6x6xf32> -> vector<4x6x6xf32>
    "tpu.trace_stop"() : () -> ()
    %22 = arith.mulf %3, %5 : vector<64x16xf32>
    %cst_16 = arith.constant dense<0.000000e+00> : vector<64x6xf32>
    %23 = tpu.matmul %22, %0, %cst_16 {dimension_numbers = #tpu.dot_dimension_numbers<[1], [0], [0], [1], [0, 0, 1, 1], [], []>} : vector<64x16xf32>, vector<16x6xf32>, vector<64x6xf32> -> vector<64x6xf32>
    %24 = vector.shape_cast %23 : vector<64x6xf32> to vector<4x16x6xf32>
    "tpu.trace_start"() <{level = 10 : i32, message = "boh,bhw->bow"}> : () -> ()
    %cst_17 = arith.constant dense<0.000000e+00> : vector<4x6x6xf32>
    %25 = tpu.matmul %7, %24, %cst_17 {dimension_numbers = #tpu.dot_dimension_numbers<[2], [1], [1], [2], [0, 0, 0, 1, 1, 2], [0], [0]>} : vector<4x6x16xf32>, vector<4x16x6xf32>, vector<4x6x6xf32> -> vector<4x6x6xf32>
    "tpu.trace_stop"() : () -> ()
    %26 = arith.mulf %10, %10 : vector<4x6x6xf32>
    %27 = arith.mulf %13, %13 : vector<4x6x6xf32>
    %28 = arith.mulf %10, %13 : vector<4x6x6xf32>
    %29 = arith.subf %17, %26 : vector<4x6x6xf32>
    %30 = arith.subf %21, %27 : vector<4x6x6xf32>
    %31 = arith.subf %25, %28 : vector<4x6x6xf32>
    %cst_18 = arith.constant 2.000000e+00 : f32
    %32 = vector.broadcast %cst_18 : f32 to vector<4x6x6xf32>
    %33 = arith.mulf %32, %28 : vector<4x6x6xf32>
    %cst_19 = arith.constant 9.99999974E-5 : f32
    %34 = vector.broadcast %cst_19 : f32 to vector<4x6x6xf32>
    %35 = arith.addf %33, %34 : vector<4x6x6xf32>
    %cst_20 = arith.constant 2.000000e+00 : f32
    %36 = vector.broadcast %cst_20 : f32 to vector<4x6x6xf32>
    %37 = arith.mulf %36, %31 : vector<4x6x6xf32>
    %cst_21 = arith.constant 8.99999984E-4 : f32
    %38 = vector.broadcast %cst_21 : f32 to vector<4x6x6xf32>
    %39 = arith.addf %37, %38 : vector<4x6x6xf32>
    %40 = arith.mulf %35, %39 : vector<4x6x6xf32>
    %41 = arith.addf %26, %27 : vector<4x6x6xf32>
    %cst_22 = arith.constant 9.99999974E-5 : f32
    %42 = vector.broadcast %cst_22 : f32 to vector<4x6x6xf32>
    %43 = arith.addf %41, %42 : vector<4x6x6xf32>
    %44 = arith.addf %29, %30 : vector<4x6x6xf32>
    %cst_23 = arith.constant 8.99999984E-4 : f32
    %45 = vector.broadcast %cst_23 : f32 to vector<4x6x6xf32>
    %46 = arith.addf %44, %45 : vector<4x6x6xf32>
    %47 = arith.mulf %43, %46 : vector<4x6x6xf32>
    %48 = tpu.reciprocal %47 {approx = true} : vector<4x6x6xf32> -> vector<4x6x6xf32>
    %49 = arith.mulf %40, %48 : vector<4x6x6xf32>
    %50 = vector.shape_cast %49 : vector<4x6x6xf32> to vector<1x4x6x6xf32>
    %cst_24 = arith.constant dense<0.000000e+00> : vector<1xf32>
    %51 = vector.multi_reduction <add>, %50, %cst_24 [1, 2, 3] : vector<1x4x6x6xf32> to vector<1xf32>
    %52 = vector.shape_cast %51 : vector<1xf32> to vector<1x1x1x1xf32>
    %53 = vector.extract %52[0, 0, 0, 0] : f32 from vector<1x1x1x1xf32>
    %54 = vector.broadcast %53 : f32 to vector<1x8x128xf32>
    %c0_25 = arith.constant 0 : index
    %c0_26 = arith.constant 0 : index
    %c0_27 = arith.constant 0 : index
    %55 = vector.load %arg5[%c0_25, %c0_26, %c0_27] : memref<1x8x128xf32, #tpu.memory_space<vmem>>, vector<1x8x128xf32>
    tpu.vector_store %arg5[%c0_25, %c0_26, %c0_27], %54 {strides = array<i32>} : memref<1x8x128xf32, #tpu.memory_space<vmem>>, vector<1x8x128xf32>,
    return
  }
  func.func @transform_0(%arg0: i32) -> (i32, i32, i32) {
    %c0_i32 = arith.constant 0 : i32
    %c0_i32_0 = arith.constant 0 : i32
    %c0_i32_1 = arith.constant 0 : i32
    return %arg0, %c0_i32, %c0_i32_0 : i32, i32, i32
  }
  func.func @transform_1(%arg0: i32) -> (i32, i32, i32) {
    %c0_i32 = arith.constant 0 : i32
    %c0_i32_0 = arith.constant 0 : i32
    %c0_i32_1 = arith.constant 0 : i32
    return %arg0, %c0_i32, %c0_i32_0 : i32, i32, i32
  }
  func.func @transform_2(%arg0: i32) -> (i32, i32) {
    %c0_i32 = arith.constant 0 : i32
    %c0_i32_0 = arith.constant 0 : i32
    %c0_i32_1 = arith.constant 0 : i32
    return %c0_i32, %c0_i32_0 : i32, i32
  }
  func.func @transform_3(%arg0: i32) -> (i32, i32) {
    %c0_i32 = arith.constant 0 : i32
    %c0_i32_0 = arith.constant 0 : i32
    %c0_i32_1 = arith.constant 0 : i32
    return %c0_i32, %c0_i32_0 : i32, i32
  }
  func.func @transform_4(%arg0: i32) -> (i32, i32, i32) {
    %c0_i32 = arith.constant 0 : i32
    %c0_i32_0 = arith.constant 0 : i32
    %c0_i32_1 = arith.constant 0 : i32
    return %arg0, %c0_i32, %c0_i32_0 : i32, i32, i32
  }
}

</mosaic_0001>

<bundles_post_ra>
// kernel: tpu_custom_call.1
= control target key start
LH: loop header
LB: loop body
LE: loop exit
PB: predicated region body
PF: predicated region fallthrough
CT: control target
= control target key end

     0   :  { %9 = vsyncpa [#allocation3], 0  ;;  %s3737_s0 = inlined_call_operand.hbm [shape: f32[8,16,16], index: 0, kind: input, shape index: {}]   ;;  %s3738_s1 = inlined_call_operand.hbm [shape: f32[8,16,16], index: 1, kind: input, shape index: {}]   ;;  %s3739_s2 = inlined_call_operand.vmem [shape: f32[16,6], index: 2, kind: input, shape index: {}]   ;;  %s3740_s3 = inlined_call_operand.vmem [shape: f32[6,16], index: 3, kind: input, shape index: {}]   ;;  %s3741_s4 = inlined_call_operand.hbm [shape: f32[2,8,128], index: 4, kind: output, shape index: {}]  }
   0x1   :  { %11 = vsyncpa [#allocation3 + $0x1], 0 }
   0x2   :  { %12 = vsyncpa [#allocation6], 0 }
   0x3   :  { %14 = vsyncpa [#allocation6 + $0x1], 0 }
   0x4   :  { %15 = vsyncpa [#allocation4], 0 }
   0x5   :  { %17 = vsyncpa [#allocation4 + $0x1], 0  ;;  %s3274_s15 = smov 0   ;;  %s3276_s16 = smov 0  }
   0x6   :  { %s3278_s17 = smov 0   ;;  %s3280_s18 = smov 0  }
   0x7 LB: > { %s3295_s19 = sadd.s32 4294967295, %s3239_s18   ;;  %s2550_s20 = sadd.s32 4294967294, %s3239_s18   ;;  %s3239_s18 = sphi %s3280_s18, %s3757_s18   ;;  %s3235_s17 = sphi %s3278_s17, %s3756_s17   ;;  %s3231_s16 = sphi %s3276_s16, %s3755_s16   ;;  %s3227_s15 = sphi %s3274_s15, %s3754_s15  }
   0x8   : > { %s3299_s21 = sadd.s32 1, %s3239_s18   ;;  %s30_s22 = sadd.s32 1, %s3235_s17 }
   0x9   : > { %s27_s23 = ssub.s32 %s3239_s18, %s3299_s21  ;;  %p37_p0 = scmp.ne.s32.totalorder %s3235_s17, %s3231_s16 }
   0xa   : > { %p28_p1 = scmp.eq.s32.totalorder %s27_s23, 0  ;;  %p38_p2 = scmp.eq.s32.totalorder %s3239_s18, 0 }
   0xb   : > { %p43_p3 = scmp.ne.s32.totalorder %s3231_s16, %s3227_s15  ;;  %p44_p4 = scmp.eq.s32.totalorder %s3295_s19, 0 }
   0xc   : > { %s3311_s24 = scalar_select %p28_p1, %s3235_s17, %s30_s22  }
   0xd   : > { %p3313_p5 = por %p38_p2, %p37_p0  ;;  %p3317_p6 = por %p44_p4, %p43_p3 }
   0xe   : > { %p135_p7 = scmp.eq.s32.totalorder %s3295_s19, 1  ;;  %p141_p8 = scmp.eq.s32.totalorder %s2550_s20, 1 }
   0xf   : > { %s3745_s26 = scalar_select %p3317_p6, 1, 0 }
  0x10   : > { %p3062_p10 = scmp.lt.s32.totalorder %s3239_s18, 2  ;;  %p3324_p11 = por %p135_p7, %p37_p0 }
  0x11   : > { %p3328_p12 = por %p141_p8, %p43_p3  ;;  %s3333_s29 = sand.u32 1, %s3235_s17  }
  0x12   : > { %s3746_s27 = scalar_select %p3324_p11, 1, 0 }
  0x13   : > { %s3747_s28 = scalar_select %p3328_p12, 1, 0 }
  0x14   : > { %s2630_s30 = sshll.u32 %s3239_s18, 10  ;;  %s2553_s5 = sshll.u32 %s3333_s29, 6 }
  0x15   : > { %s3342_s8 = scalar_lea.hbm %s3737_s0, %s2630_s30  ;;  %s171_s9 = scalar_lea.vmem [#allocation2], %s2553_s5 }
  0x16   : > { %s179_s10 = sshll.u32 %s171_s9, 4  ;;  %p3348_p13 = pnand %p3062_p10, %p3313_p5  ;;  %s3352_s10 = int_to_ptr.vmem [resolvable:$true] %s179_s10 }
  0x17   : > { %s168_s12 = scalar_lea.sflag [#allocation3], %s3333_s29  ;;  %s3109_s13 = scalar_lea.hbm %s3342_s8, 1024 }
  0x18   : > { %p3110_p0 = scmp.ne.s32.totalorder %s3342_s8, %s3109_s13  ;;  %p3111_p1 = pneg %p3348_p13 }
  0x19   : > { %s3114_s22 = scalar_lea.hbm %s3737_s0, 2048  ;;  %p3115_p4 = scmp.lt.u32.totalorder %s3342_s8, %s3737_s0 }
  0x1a   : > { %p3112_p2 = pnand %p3111_p1, %p3110_p0  ;;  %p3116_p5 = scmp.lt.u32.totalorder %s3114_s22, %s3109_s13 }
  0x1b   : > { %p3118_p8 = scmp.lt.u32.totalorder %s3109_s13, %s3342_s8 }
  0x1c   : > { %p3113_p3 = pneg %p3112_p2  ;;  %p3117_p7 = por %p3116_p5, %p3115_p4 }
  0x1e   : > { %p3119_p10 = por %p3118_p8, %p3117_p7 }
  0x20   : > { %p3120_p9 = pnand %p3119_p10, %p3113_p3 }
  0x22   : > { %3123 = shalt.err (!%p3120_p9)
}
  0x23   : > { %s3124_s6 = scalar_lea.vmem %s3352_s10, 1024  ;;  %s3241_s7 = smov [#allocation2]  }
  0x24   : > { %p3125_p0 = scmp.ne.s32.totalorder %s3352_s10, %s3124_s6  ;;  %s3129_s9 = sshll.u32 %s3241_s7, 4  ;;  %s3130_s9 = int_to_ptr.vmem [resolvable:$false] %s3129_s9 }
  0x25   : > { %s3131_s14 = scalar_lea.vmem %s3130_s9, 2048  ;;  %p3132_p11 = scmp.lt.s32.totalorder %s3352_s10, %s3130_s9 }
  0x26   : > { %p3127_p2 = pnand %p3125_p0, %p3111_p1  ;;  %p3133_p4 = scmp.lt.s32.totalorder %s3131_s14, %s3124_s6 }
  0x28   : > { %p3128_p12 = pneg %p3127_p2  ;;  %p3134_p5 = por %p3133_p4, %p3132_p11 }
  0x2a   : > { %p3135_p7 = pnand %p3134_p5, %p3128_p12 }
  0x2c   : > { %3138 = shalt.err (!%p3135_p7)
}
  0x2d   : > { %s3242_s13 = smov 128   ;;  %s3243_s20 = smov 8  }
  0x2e   : > { %3054 = dma.hbm_to_vmem [thread:$0]  (!%p3348_p13), %s3342_s8, 1024, %s3352_s10, %s168_s12, %s3242_s13, %s3242_s13, %s3243_s20  }
  0x2f   : > { %p2561_p9 = scmp.ge.s32.totalorder %s3239_s18, 1  ;;  %p209_p11 = scmp.lt.s32.totalorder %s3239_s18, 3 }
  0x30   : > { %s3396_s6 = scalar_lea.hbm %s3738_s1, %s2630_s30  ;;  %s193_s7 = scalar_lea.vmem [#allocation5], %s2553_s5 }
  0x31   : > { %p3387_p12 = pnand %p2561_p9, %p209_p11  ;;  %s201_s9 = sshll.u32 %s193_s7, 4  ;;  %s3400_s9 = int_to_ptr.vmem [resolvable:$true] %s201_s9 }
  0x32   : > { %s190_s8 = scalar_lea.sflag [#allocation6], %s3333_s29  ;;  %s3139_s10 = scalar_lea.hbm %s3396_s6, 1024 }
  0x33   : > { %p3140_p3 = scmp.ne.s32.totalorder %s3396_s6, %s3139_s10  ;;  %s3144_s30 = scalar_lea.hbm %s3738_s1, 2048 }
  0x34   : > { %p3145_p0 = scmp.lt.u32.totalorder %s3396_s6, %s3738_s1  ;;  %p3146_p2 = scmp.lt.u32.totalorder %s3144_s30, %s3139_s10 }
  0x35   : > { %p3142_p8 = pnand %p3140_p3, %p3111_p1  ;;  %p3148_p5 = scmp.lt.u32.totalorder %s3139_s10, %s3396_s6 }
  0x36   : > { %p3147_p4 = por %p3146_p2, %p3145_p0 }
  0x37   : > { %p3143_p10 = pneg %p3142_p8 }
  0x38   : > { %p3149_p7 = por %p3148_p5, %p3147_p4 }
  0x3a   : > { %p3150_p9 = pnand %p3149_p7, %p3143_p10 }
  0x3c   : > { %3153 = shalt.err (!%p3150_p9)
}
  0x3d   : > { %s3154_s5 = scalar_lea.vmem %s3400_s9, 1024  ;;  %s3244_s7 = smov [#allocation5]  }
  0x3e   : > { %p3155_p11 = scmp.ne.s32.totalorder %s3400_s9, %s3154_s5  ;;  %s3159_s12 = sshll.u32 %s3244_s7, 4  ;;  %s3160_s12 = int_to_ptr.vmem [resolvable:$false] %s3159_s12 }
  0x3f   : > { %s3161_s14 = scalar_lea.vmem %s3160_s12, 2048  ;;  %p3162_p6 = scmp.lt.s32.totalorder %s3400_s9, %s3160_s12 }
  0x40   : > { %p3157_p3 = pnand %p3155_p11, %p3111_p1  ;;  %p3163_p0 = scmp.lt.s32.totalorder %s3161_s14, %s3154_s5 }
  0x42   : > { %p3158_p8 = pneg %p3157_p3  ;;  %p3164_p2 = por %p3163_p0, %p3162_p6 }
  0x44   : > { %p3165_p4 = pnand %p3164_p2, %p3158_p8 }
  0x46   : > { %3168 = shalt.err (!%p3165_p4)
}
  0x47   : > { %3057 = dma.hbm_to_vmem [thread:$0]  (!%p3348_p13), %s3396_s6, 1024, %s3400_s9, %s190_s8, %s3242_s13, %s3242_s13, %s3243_s20  }
  0x48   : > { %213 = sbr.rel (%p3387_p12) target bundleno = 827 (0x33b), region = 36  ;;  %s3434_s10 = sand.u32 (!%p3387_p12), 1, %s3231_s16  }
  0x49   : > { %s2562_s30 = sshll.u32 (!%p3387_p12), %s3434_s10, 6  ;;  %s216_s23 = scalar_lea.sflag (!%p3387_p12), [#allocation3], %s3434_s10 }
  0x4a   : > { %s219_s11 = scalar_lea.vmem (!%p3387_p12), [#allocation2], %s2562_s30  ;;  %p3750_p6 = scmp.ne.s32.totalorder (!%p3387_p12), %s3745_s26, 0 }
  0x4f   : > { %3214 = dma.done.wait (%p3750_p6), %s216_s23, 1024  }
  0x50   : > { %3216 = vsyncadd (%p3750_p6), %s216_s23, 4294966272  ;;  %s225_s29 = scalar_lea.sflag [#allocation6], %s3434_s10  ;;  %s3443_s13 = scalar_lea.vmem [#allocation5], %s2562_s30 }
  0x51   : > { %3218 = dma.done.wait (%p3750_p6), %s225_s29, 1024  }
  0x52   : > { %3220 = vsyncadd (%p3750_p6), %s225_s29, 4294966272  ;;  %vm279_vm0 = vcmask 130048   ;;  %v260_v0 = vld [vmem:[%s3739_s2] sm:$0xff]  ;;  %v261_v1 = vld [vmem:[%s3739_s2 + $0x8] sm:$0xff]  ;;  %v3245_v43 = vmov 0.0|0.0   ;;  %vm3246_vm1 = vmmov 0  }
  0x53   : > { %v3455_v2 = vld [vmem:[%s219_s11] sm:$0xff]  ;;  %v3457_v3 = vpack.c.bf16 %v261_v1, %v260_v0  ;;  %v3463_v4 = vld [vmem:[%s219_s11 + $0x8] sm:$0xff]  ;;  %v3466_v5 = vld [vmem:[%s219_s11 + $0x10] sm:$0xff]  ;;  %2967 = vmatprep.subr.bf16.mxu1 %v3245_v43  ;;  %v3247_v44 = vmov 0.0   ;;  %vm2424_vm2 = vcmask 46080   ;;  %s2564_s25 = sshll.u32 %s3434_s10, 3 }
  0x54   : > { %2747 = vmatprep.mubr.msk.f32.mxu0 %vm279_vm0, %v3455_v2  ;;  %v3473_v6 = vld [vmem:[%s219_s11 + $0x18] sm:$0xff]  ;;  %v3475_v7 = vld [vmem:[%s219_s11 + $0x20] sm:$0xff]  ;;  %v3482_v8 = vld [vmem:[%s219_s11 + $0x28] sm:$0xff]  ;;  %v1101_v18 = vmul.f32 %v3455_v2, %v3455_v2  ;;  %v1102_v20 = vmul.f32 %v3463_v4, %v3463_v4  ;;  %v1103_v21 = vmul.f32 %v3466_v5, %v3466_v5  ;;  %2763 = vmatprep.mubr.msk.f32.mxu1 %vm3246_vm1, %v3247_v44  ;;  %s257_s5 = scalar_lea.vmem [#allocation7], %s2564_s25  ;;  %s2626_s12 = sshll.u32 %s3295_s19, 7 }
  0x55   : > { %2964 = vmatprep.subr.bf16.mxu0 %v3457_v3  ;;  %v3484_v9 = vld [vmem:[%s219_s11 + $0x30] sm:$0xff]  ;;  %v3490_v10 = vld [vmem:[%s219_s11 + $0x38] sm:$0xff]  ;;  %v271_v11 = vld [vmem:[%s3443_s13] sm:$0xff]  ;;  %v1104_v22 = vmul.f32 %v3473_v6, %v3473_v6  ;;  %v1105_v23 = vmul.f32 %v3475_v7, %v3475_v7  ;;  %v1106_v24 = vmul.f32 %v3482_v8, %v3482_v8  ;;  %s2457_s7 = sshll.u32 %s257_s5, 4  ;;  %s3695_s11 = scalar_lea.hbm %s3741_s4, %s2626_s12  ;;  %s3690_s7 = int_to_ptr.vmem [resolvable:$true] %s2457_s7 }
  0x56   : > { %2966 = vmatpush3.bf16.msra.mxu0 %v3457_v3  ;;  %v272_v12 = vld [vmem:[%s3443_s13 + $0x8] sm:$0xff]  ;;  %v273_v13 = vld [vmem:[%s3443_s13 + $0x10] sm:$0xff]  ;;  %v274_v14 = vld [vmem:[%s3443_s13 + $0x18] sm:$0xff]  ;;  %v1107_v25 = vmul.f32 %v3484_v9, %v3484_v9  ;;  %v1108_v26 = vmul.f32 %v3490_v10, %v3490_v10  ;;  %v1518_v27 = vmul.f32 %v271_v11, %v271_v11  ;;  %v1935_v35 = vmul.f32 %v271_v11, %v3455_v2  ;;  %s2444_s29 = scalar_lea.sflag [#allocation4], %s3434_s10  ;;  %p3751_p1 = scmp.ne.s32.totalorder %s3746_s27, 0 }
  0x57   : > { %2980 = vmatprep.subr.bf16.mxu0 %v3457_v3  ;;  %v275_v15 = vld [vmem:[%s3443_s13 + $0x20] sm:$0xff]  ;;  %v276_v16 = vld [vmem:[%s3443_s13 + $0x28] sm:$0xff]  ;;  %v277_v17 = vld [vmem:[%s3443_s13 + $0x30] sm:$0xff]  ;;  %v1519_v28 = vmul.f32 %v272_v12, %v272_v12  ;;  %v1520_v29 = vmul.f32 %v273_v13, %v273_v13  ;;  %v1521_v30 = vmul.f32 %v274_v14, %v274_v14  ;;  %v1936_v36 = vmul.f32 %v272_v12, %v3463_v4  ;;  %s3248_s19 = smov [#allocation7]  }
  0x58   : > { %v278_v19 = vld [vmem:[%s3443_s13 + $0x38] sm:$0xff]  ;;  %v1522_v31 = vmul.f32 %v275_v15, %v275_v15  ;;  %v1523_v32 = vmul.f32 %v276_v16, %v276_v16  ;;  %v1524_v33 = vmul.f32 %v277_v17, %v277_v17  ;;  %v1937_v37 = vmul.f32 %v273_v13, %v3466_v5  ;;  %v3569_v49 = vld [vmem:[%s3740_s3] sm:$0x3f]  ;;  %s3169_s13 = scalar_lea.vmem %s3690_s7, 128  ;;  %s3173_s20 = sshll.u32 %s3248_s19, 4  ;;  %s3174_s20 = int_to_ptr.vmem [resolvable:$false] %s3173_s20 }
  0x59   : > { %2748 = vmatmul.mubr.msk.f32.vlgmr.msra.gmra.mrb[0].mxu0 %vm279_vm0, %v3463_v4  ;;  %v1525_v34 = vmul.f32 %v278_v19, %v278_v19  ;;  %v1938_v38 = vmul.f32 %v274_v14, %v3473_v6  ;;  %v1939_v39 = vmul.f32 %v275_v15, %v3475_v7  ;;  %v1940_v40 = vmul.f32 %v276_v16, %v3482_v8  ;;  %p3170_p13 = scmp.ne.s32.totalorder %s3690_s7, %s3169_s13  ;;  %s3175_s22 = scalar_lea.vmem %s3174_s20, 256 }
  0x5a   : > { %2982 = vmatpush3.bf16.msra.mxu0 %v3457_v3  ;;  %2750 = vmatprep.mubr.msk.f32.mxu0 %vm279_vm0, %v3466_v5  ;;  %v1941_v41 = vmul.f32 %v277_v17, %v3484_v9  ;;  %v1942_v42 = vmul.f32 %v278_v19, %v3490_v10  ;;  %p3176_p5 = scmp.lt.s32.totalorder %s3690_s7, %s3174_s20  ;;  %p3177_p7 = scmp.lt.s32.totalorder %s3175_s22, %s3169_s13 }
  0x5b   : > { %2996 = vmatprep.subr.bf16.mxu0 %v3457_v3  ;;  %p3171_p12 = pnand %p3170_p13, %p3751_p1 }
  0x5c   : > { %p3178_p9 = por %p3177_p7, %p3176_p5 }
  0x5d   : > { %2751 = vmatmul.mubr.msk.f32.gmra.mrb[2].mxu0 %vm279_vm0, %v3473_v6  ;;  %p3172_p10 = pneg %p3171_p12 }
  0x5e   : > { %2753 = vmatprep.mubr.msk.f32.mxu0 %vm279_vm0, %v3475_v7 }
  0x5f   : > { %p3179_p11 = pnand %p3178_p9, %p3172_p10 }
  0x61   : > { %2754 = vmatmul.mubr.msk.f32.gmra.mrb[4].mxu0 %vm279_vm0, %v3482_v8 }
  0x62   : > { %2756 = vmatprep.mubr.msk.f32.mxu0 %vm279_vm0, %v3484_v9 }
  0x65   : > { %2757 = vmatmul.mubr.msk.f32.gmra.mrb[6].mxu0 %vm279_vm0, %v3490_v10 }
  0x66   : > { %2791 = vmatprep.mubr.msk.f32.mxu0 %vm279_vm0, %v271_v11 }
  0x69   : > { %2792 = vmatmul.mubr.msk.f32.vlgmr.msra.gmra.mrb[8].mxu0 %vm279_vm0, %v272_v12 }
  0x6a   : > { %2998 = vmatpush3.bf16.msra.mxu0 %v3457_v3  ;;  %2794 = vmatprep.mubr.msk.f32.mxu0 %vm279_vm0, %v273_v13 }
  0x6b   : > { %3012 = vmatprep.subr.bf16.mxu0 %v3457_v3 }
  0x6d   : > { %2795 = vmatmul.mubr.msk.f32.gmra.mrb[10].mxu0 %vm279_vm0, %v274_v14 }
  0x6e   : > { %2797 = vmatprep.mubr.msk.f32.mxu0 %vm279_vm0, %v275_v15 }
  0x71   : > { %2798 = vmatmul.mubr.msk.f32.gmra.mrb[12].mxu0 %vm279_vm0, %v276_v16 }
  0x72   : > { %2800 = vmatprep.mubr.msk.f32.mxu0 %vm279_vm0, %v277_v17 }
  0x75   : > { %2801 = vmatmul.mubr.msk.f32.gmra.mrb[14].mxu0 %vm279_vm0, %v278_v19 }
  0x76   : > { %2835 = vmatprep.mubr.msk.f32.mxu0 %vm279_vm0, %v1101_v18 }
  0x79   : > { %2836 = vmatmul.mubr.msk.f32.vlgmr.msra.gmra.mrb[16].mxu0 %vm279_vm0, %v1102_v20 }
  0x7a   : > { %3014 = vmatpush3.bf16.msra.mxu0 %v3457_v3  ;;  %2838 = vmatprep.mubr.msk.f32.mxu0 %vm279_vm0, %v1103_v21 }
  0x7b   : > { %3028 = vmatprep.subr.bf16.mxu0 %v3457_v3 }
  0x7d   : > { %2839 = vmatmul.mubr.msk.f32.gmra.mrb[18].mxu0 %vm279_vm0, %v1104_v22 }
  0x7e   : > { %2841 = vmatprep.mubr.msk.f32.mxu0 %vm279_vm0, %v1105_v23 }
  0x81   : > { %2842 = vmatmul.mubr.msk.f32.gmra.mrb[20].mxu0 %vm279_vm0, %v1106_v24 }
  0x82   : > { %2844 = vmatprep.mubr.msk.f32.mxu0 %vm279_vm0, %v1107_v25 }
  0x85   : > { %2845 = vmatmul.mubr.msk.f32.gmra.mrb[22].mxu0 %vm279_vm0, %v1108_v26 }
  0x86   : > { %2879 = vmatprep.mubr.msk.f32.mxu0 %vm279_vm0, %v1518_v27 }
  0x89   : > { %2880 = vmatmul.mubr.msk.f32.vlgmr.msra.gmra.mrb[24].mxu0 %vm279_vm0, %v1519_v28 }
  0x8a   : > { %3030 = vmatpush3.bf16.msra.mxu0 %v3457_v3  ;;  %2882 = vmatprep.mubr.msk.f32.mxu0 %vm279_vm0, %v1520_v29 }
  0x8d   : > { %2883 = vmatmul.mubr.msk.f32.gmra.mrb[26].mxu0 %vm279_vm0, %v1521_v30 }
  0x8e   : > { %2885 = vmatprep.mubr.msk.f32.mxu0 %vm279_vm0, %v1522_v31 }
  0x91   : > { %2886 = vmatmul.mubr.msk.f32.gmra.mrb[28].mxu0 %vm279_vm0, %v1523_v32 }
  0x92   : > { %2888 = vmatprep.mubr.msk.f32.mxu0 %vm279_vm0, %v1524_v33 }
  0x95   : > { %2889 = vmatmul.mubr.msk.f32.gmra.mrb[30].mxu0 %vm279_vm0, %v1525_v34 }
  0x96   : > { %2923 = vmatprep.mubr.msk.f32.mxu0 %vm279_vm0, %v1935_v35 }
  0x99   : > { %2924 = vmatmul.mubr.msk.f32.vlgmr.msra.gmra.mrb[32].mxu0 %vm279_vm0, %v1936_v36 }
  0x9a   : > { %2926 = vmatprep.mubr.msk.f32.mxu0 %vm279_vm0, %v1937_v37 }
  0x9d   : > { %2927 = vmatmul.mubr.msk.f32.gmra.mrb[34].mxu0 %vm279_vm0, %v1938_v38 }
  0x9e   : > { %2929 = vmatprep.mubr.msk.f32.mxu0 %vm279_vm0, %v1939_v39 }
  0xa1   : > { %2930 = vmatmul.mubr.msk.f32.gmra.mrb[36].mxu0 %vm279_vm0, %v1940_v40 }
  0xa2   : > { %2932 = vmatprep.mubr.msk.f32.mxu0 %vm279_vm0, %v1941_v41 }
  0xa5   : > { %2933 = vmatmul.mubr.msk.f32.gmra.mrb[38].mxu0 %vm279_vm0, %v1942_v42 }
 0x12c   : > { %v2749_v45 = vpop.f32.mrb[0].mxu0 }
 0x12d   : > { %v370_v46 = vpop.f32.mrb[1].mxu0 }
 0x12e   : > { %v2968_v47 = vpack.c.bf16 %v2749_v45, %v370_v46 }
 0x130   : > { %v2752_v48 = vpop.f32.mrb[2].mxu0  ;;  %2969 = vmatpush3.bf16.msra.mxu1 %v2968_v47 }
 0x131   : > { %v380_v50 = vpop.f32.mrb[3].mxu0  ;;  %2970 = vmatprep.subr.bf16.mxu1 %v3245_v43 }
 0x132   : > { %v2971_v51 = vpack.c.bf16 %v2752_v48, %v380_v50 }
 0x133   : > { %2764 = vmatmul.mubr.msk.f32.vlgmr.msra.gmra.mrb[0].mxu1 %vm279_vm0, %v3569_v49 }
 0x134   : > { %v2755_v52 = vpop.f32.mrb[4].mxu0  ;;  %2972 = vmatpush3.bf16.msra.mxu1 %v2971_v51  ;;  %2770 = vmatprep.mubr.msk.f32.mxu1 %vm3246_vm1, %v3247_v44 }
 0x135   : > { %v390_v53 = vpop.f32.mrb[5].mxu0  ;;  %2973 = vmatprep.subr.bf16.mxu1 %v3245_v43 }
 0x136   : > { %v2974_v54 = vpack.c.bf16 %v2755_v52, %v390_v53 }
 0x137   : > { %2771 = vmatmul.mubr.msk.f32.vlgmr.msra.gmra.mrb[2].mxu1 %vm279_vm0, %v3569_v49 }
 0x138   : > { %v2758_v55 = vpop.f32.mrb[6].mxu0  ;;  %2975 = vmatpush3.bf16.msra.mxu1 %v2974_v54  ;;  %2777 = vmatprep.mubr.msk.f32.mxu1 %vm3246_vm1, %v3247_v44 }
 0x139   : > { %v400_v56 = vpop.f32.mrb[7].mxu0  ;;  %2976 = vmatprep.subr.bf16.mxu1 %v3245_v43 }
 0x13a   : > { %v2977_v57 = vpack.c.bf16 %v2758_v55, %v400_v56 }
 0x13b   : > { %2778 = vmatmul.mubr.msk.f32.vlgmr.msra.gmra.mrb[4].mxu1 %vm279_vm0, %v3569_v49 }
 0x13c   : > { %2978 = vmatpush3.bf16.msra.mxu1 %v2977_v57  ;;  %v2793_v58 = vpop.f32.mrb[8].mxu0  ;;  %2784 = vmatprep.mubr.msk.f32.mxu1 %vm3246_vm1, %v3247_v44 }
 0x13d   : > { %v782_v59 = vpop.f32.mrb[9].mxu0  ;;  %2983 = vmatprep.subr.bf16.mxu1 %v3245_v43 }
 0x13e   : > { %v2984_v60 = vpack.c.bf16 %v2793_v58, %v782_v59 }
 0x13f   : > { %2785 = vmatmul.mubr.msk.f32.vlgmr.msra.gmra.mrb[6].mxu1 %vm279_vm0, %v3569_v49 }
 0x140   : > { %v2796_v61 = vpop.f32.mrb[10].mxu0  ;;  %2985 = vmatpush3.bf16.msra.mxu1 %v2984_v60  ;;  %2807 = vmatprep.mubr.msk.f32.mxu1 %vm3246_vm1, %v3247_v44 }
 0x141   : > { %v792_v62 = vpop.f32.mrb[11].mxu0  ;;  %2986 = vmatprep.subr.bf16.mxu1 %v3245_v43 }
 0x142   : > { %v2987_v63 = vpack.c.bf16 %v2796_v61, %v792_v62 }
 0x143   : > { %2808 = vmatmul.mubr.msk.f32.vlgmr.msra.gmra.mrb[8].mxu1 %vm279_vm0, %v3569_v49 }
 0x144   : > { %v2799_v0 = vpop.f32.mrb[12].mxu0  ;;  %2988 = vmatpush3.bf16.msra.mxu1 %v2987_v63  ;;  %2814 = vmatprep.mubr.msk.f32.mxu1 %vm3246_vm1, %v3247_v44 }
 0x145   : > { %v802_v1 = vpop.f32.mrb[13].mxu0  ;;  %2989 = vmatprep.subr.bf16.mxu1 %v3245_v43 }
 0x146   : > { %v2990_v2 = vpack.c.bf16 %v2799_v0, %v802_v1 }
 0x147   : > { %2815 = vmatmul.mubr.msk.f32.vlgmr.msra.gmra.mrb[10].mxu1 %vm279_vm0, %v3569_v49 }
 0x148   : > { %v2802_v3 = vpop.f32.mrb[14].mxu0  ;;  %2991 = vmatpush3.bf16.msra.mxu1 %v2990_v2  ;;  %2821 = vmatprep.mubr.msk.f32.mxu1 %vm3246_vm1, %v3247_v44 }
 0x149   : > { %v812_v4 = vpop.f32.mrb[15].mxu0  ;;  %2992 = vmatprep.subr.bf16.mxu1 %v3245_v43 }
 0x14a   : > { %v2993_v5 = vpack.c.bf16 %v2802_v3, %v812_v4 }
 0x14b   : > { %2822 = vmatmul.mubr.msk.f32.vlgmr.msra.gmra.mrb[12].mxu1 %vm279_vm0, %v3569_v49 }
 0x14c   : > { %2994 = vmatpush3.bf16.msra.mxu1 %v2993_v5  ;;  %v2837_v6 = vpop.f32.mrb[16].mxu0  ;;  %2828 = vmatprep.mubr.msk.f32.mxu1 %vm3246_vm1, %v3247_v44 }
 0x14d   : > { %v1199_v7 = vpop.f32.mrb[17].mxu0  ;;  %2999 = vmatprep.subr.bf16.mxu1 %v3245_v43 }
 0x14e   : > { %v3000_v8 = vpack.c.bf16 %v2837_v6, %v1199_v7 }
 0x14f   : > { %2829 = vmatmul.mubr.msk.f32.vlgmr.msra.gmra.mrb[14].mxu1 %vm279_vm0, %v3569_v49 }
 0x150   : > { %v2840_v9 = vpop.f32.mrb[18].mxu0  ;;  %3001 = vmatpush3.bf16.msra.mxu1 %v3000_v8  ;;  %2851 = vmatprep.mubr.msk.f32.mxu1 %vm3246_vm1, %v3247_v44 }
 0x151   : > { %v1209_v10 = vpop.f32.mrb[19].mxu0  ;;  %3002 = vmatprep.subr.bf16.mxu1 %v3245_v43 }
 0x152   : > { %v3003_v11 = vpack.c.bf16 %v2840_v9, %v1209_v10 }
 0x153   : > { %2852 = vmatmul.mubr.msk.f32.vlgmr.msra.gmra.mrb[16].mxu1 %vm279_vm0, %v3569_v49 }
 0x154   : > { %v2843_v12 = vpop.f32.mrb[20].mxu0  ;;  %3004 = vmatpush3.bf16.msra.mxu1 %v3003_v11  ;;  %2858 = vmatprep.mubr.msk.f32.mxu1 %vm3246_vm1, %v3247_v44 }
 0x155   : > { %v1219_v13 = vpop.f32.mrb[21].mxu0  ;;  %3005 = vmatprep.subr.bf16.mxu1 %v3245_v43 }
 0x156   : > { %v3006_v14 = vpack.c.bf16 %v2843_v12, %v1219_v13 }
 0x157   : > { %2859 = vmatmul.mubr.msk.f32.vlgmr.msra.gmra.mrb[18].mxu1 %vm279_vm0, %v3569_v49 }
 0x158   : > { %v2846_v15 = vpop.f32.mrb[22].mxu0  ;;  %3007 = vmatpush3.bf16.msra.mxu1 %v3006_v14  ;;  %2865 = vmatprep.mubr.msk.f32.mxu1 %vm3246_vm1, %v3247_v44 }
 0x159   : > { %v1229_v16 = vpop.f32.mrb[23].mxu0  ;;  %3008 = vmatprep.subr.bf16.mxu1 %v3245_v43 }
 0x15a   : > { %v3009_v17 = vpack.c.bf16 %v2846_v15, %v1229_v16 }
 0x15b   : > { %2866 = vmatmul.mubr.msk.f32.vlgmr.msra.gmra.mrb[20].mxu1 %vm279_vm0, %v3569_v49 }
 0x15c   : > { %3010 = vmatpush3.bf16.msra.mxu1 %v3009_v17  ;;  %v2881_v18 = vpop.f32.mrb[24].mxu0  ;;  %2872 = vmatprep.mubr.msk.f32.mxu1 %vm3246_vm1, %v3247_v44 }
 0x15d   : > { %v1616_v19 = vpop.f32.mrb[25].mxu0  ;;  %3015 = vmatprep.subr.bf16.mxu1 %v3245_v43 }
 0x15e   : > { %v3016_v20 = vpack.c.bf16 %v2881_v18, %v1616_v19 }
 0x15f   : > { %2873 = vmatmul.mubr.msk.f32.vlgmr.msra.gmra.mrb[22].mxu1 %vm279_vm0, %v3569_v49 }
 0x160   : > { %v2884_v21 = vpop.f32.mrb[26].mxu0  ;;  %3017 = vmatpush3.bf16.msra.mxu1 %v3016_v20  ;;  %2895 = vmatprep.mubr.msk.f32.mxu1 %vm3246_vm1, %v3247_v44 }
 0x161   : > { %v1626_v22 = vpop.f32.mrb[27].mxu0  ;;  %3018 = vmatprep.subr.bf16.mxu1 %v3245_v43 }
 0x162   : > { %v3019_v23 = vpack.c.bf16 %v2884_v21, %v1626_v22 }
 0x163   : > { %2896 = vmatmul.mubr.msk.f32.vlgmr.msra.gmra.mrb[24].mxu1 %vm279_vm0, %v3569_v49 }
 0x164   : > { %v2887_v24 = vpop.f32.mrb[28].mxu0  ;;  %3020 = vmatpush3.bf16.msra.mxu1 %v3019_v23  ;;  %2902 = vmatprep.mubr.msk.f32.mxu1 %vm3246_vm1, %v3247_v44 }
 0x165   : > { %v1636_v25 = vpop.f32.mrb[29].mxu0  ;;  %3021 = vmatprep.subr.bf16.mxu1 %v3245_v43 }
 0x166   : > { %v3022_v26 = vpack.c.bf16 %v2887_v24, %v1636_v25 }
 0x167   : > { %2903 = vmatmul.mubr.msk.f32.vlgmr.msra.gmra.mrb[26].mxu1 %vm279_vm0, %v3569_v49 }
 0x168   : > { %v2890_v27 = vpop.f32.mrb[30].mxu0  ;;  %3023 = vmatpush3.bf16.msra.mxu1 %v3022_v26  ;;  %2909 = vmatprep.mubr.msk.f32.mxu1 %vm3246_vm1, %v3247_v44 }
 0x169   : > { %v1646_v28 = vpop.f32.mrb[31].mxu0  ;;  %3024 = vmatprep.subr.bf16.mxu1 %v3245_v43 }
 0x16a   : > { %v3025_v29 = vpack.c.bf16 %v2890_v27, %v1646_v28 }
 0x16b   : > { %2910 = vmatmul.mubr.msk.f32.vlgmr.msra.gmra.mrb[28].mxu1 %vm279_vm0, %v3569_v49 }
 0x16c   : > { %3026 = vmatpush3.bf16.msra.mxu1 %v3025_v29  ;;  %v2925_v30 = vpop.f32.mrb[32].mxu0  ;;  %2916 = vmatprep.mubr.msk.f32.mxu1 %vm3246_vm1, %v3247_v44 }
 0x16d   : > { %v2033_v31 = vpop.f32.mrb[33].mxu0  ;;  %3031 = vmatprep.subr.bf16.mxu1 %v3245_v43 }
 0x16e   : > { %v3032_v32 = vpack.c.bf16 %v2925_v30, %v2033_v31 }
 0x16f   : > { %2917 = vmatmul.mubr.msk.f32.vlgmr.msra.gmra.mrb[30].mxu1 %vm279_vm0, %v3569_v49 }
 0x170   : > { %v2928_v33 = vpop.f32.mrb[34].mxu0  ;;  %3033 = vmatpush3.bf16.msra.mxu1 %v3032_v32  ;;  %2939 = vmatprep.mubr.msk.f32.mxu1 %vm3246_vm1, %v3247_v44 }
 0x171   : > { %v2043_v34 = vpop.f32.mrb[35].mxu0  ;;  %3034 = vmatprep.subr.bf16.mxu1 %v3245_v43 }
 0x172   : > { %v3035_v35 = vpack.c.bf16 %v2928_v33, %v2043_v34 }
 0x173   : > { %2940 = vmatmul.mubr.msk.f32.vlgmr.msra.gmra.mrb[32].mxu1 %vm279_vm0, %v3569_v49 }
 0x174   : > { %v2931_v36 = vpop.f32.mrb[36].mxu0  ;;  %3036 = vmatpush3.bf16.msra.mxu1 %v3035_v35  ;;  %2946 = vmatprep.mubr.msk.f32.mxu1 %vm3246_vm1, %v3247_v44 }
 0x175   : > { %v2053_v37 = vpop.f32.mrb[37].mxu0  ;;  %3037 = vmatprep.subr.bf16.mxu1 %v3245_v43 }
 0x176   : > { %v3038_v38 = vpack.c.bf16 %v2931_v36, %v2053_v37 }
 0x177   : > { %2947 = vmatmul.mubr.msk.f32.vlgmr.msra.gmra.mrb[34].mxu1 %vm279_vm0, %v3569_v49 }
 0x178   : > { %v2934_v39 = vpop.f32.mrb[38].mxu0  ;;  %3039 = vmatpush3.bf16.msra.mxu1 %v3038_v38  ;;  %2953 = vmatprep.mubr.msk.f32.mxu1 %vm3246_vm1, %v3247_v44 }
 0x179   : > { %v2063_v40 = vpop.f32.mrb[39].mxu0  ;;  %3040 = vmatprep.subr.bf16.mxu1 %v3245_v43 }
 0x17a   : > { %v3041_v41 = vpack.c.bf16 %v2934_v39, %v2063_v40 }
 0x17b   : > { %2954 = vmatmul.mubr.msk.f32.vlgmr.msra.gmra.mrb[36].mxu1 %vm279_vm0, %v3569_v49 }
 0x17c   : > { %3042 = vmatpush3.bf16.msra.mxu1 %v3041_v41  ;;  %2960 = vmatprep.mubr.msk.f32.mxu1 %vm3246_vm1, %v3247_v44 }
 0x17f   : > { %2961 = vmatmul.mubr.msk.f32.vlgmr.msra.gmra.mrb[38].mxu1 %vm279_vm0, %v3569_v49 }
 0x206   : > { %v478_v42 = vpop.f32.mrb[0].mxu1 }
 0x207   : > { %v2765_v45 = vpop.f32.mrb[1].mxu1  ;;  %v2352_v53 = vmul.f32 %v478_v42, %v478_v42 }
 0x20a   : > { %v548_v46 = vpop.f32.mrb[2].mxu1 }
 0x20b   : > { %v2772_v47 = vpop.f32.mrb[3].mxu1  ;;  %v2353_v44 = vmul.f32 %v548_v46, %v548_v46 }
 0x20e   : > { %v618_v48 = vpop.f32.mrb[4].mxu1 }
 0x20f   : > { %v2779_v50 = vpop.f32.mrb[5].mxu1  ;;  %v2354_v63 = vmul.f32 %v618_v48, %v618_v48 }
 0x212   : > { %v688_v51 = vpop.f32.mrb[6].mxu1 }
 0x213   : > { %v2786_v52 = vpop.f32.mrb[7].mxu1  ;;  %v2355_v5 = vmul.f32 %v688_v51, %v688_v51 }
 0x216   : > { %v887_v43 = vpop.f32.mrb[8].mxu1 }
 0x217   : > { %v2356_v54 = vmul.f32 %v887_v43, %v887_v43  ;;  %v3668_v55 = vmul.f32 %v887_v43, %v478_v42  ;;  %v2809_v56 = vpop.f32.mrb[9].mxu1 }
 0x219   : > { %v2396_v57 = vadd.f32 %v2356_v54, %v2352_v53 }
 0x21a   : > { %v957_v58 = vpop.f32.mrb[10].mxu1 }
 0x21b   : > { %v2357_v59 = vmul.f32 %v957_v58, %v957_v58  ;;  %v3670_v60 = vmul.f32 %v957_v58, %v548_v46  ;;  %v2816_v49 = vpop.f32.mrb[11].mxu1  ;;  %v2400_v27 = vadd.f32 0.0001, %v2396_v57 }
 0x21d   : > { %v2397_v61 = vadd.f32 %v2357_v59, %v2353_v44 }
 0x21e   : > { %v1027_v62 = vpop.f32.mrb[12].mxu1 }
 0x21f   : > { %v2358_v0 = vmul.f32 %v1027_v62, %v1027_v62  ;;  %v3672_v1 = vmul.f32 %v1027_v62, %v618_v48  ;;  %v2823_v2 = vpop.f32.mrb[13].mxu1  ;;  %v2401_v34 = vadd.f32 0.0001, %v2397_v61 }
 0x221   : > { %v2398_v3 = vadd.f32 %v2358_v0, %v2354_v63 }
 0x222   : > { %v1097_v4 = vpop.f32.mrb[14].mxu1 }
 0x223   : > { %v2359_v6 = vmul.f32 %v1097_v4, %v1097_v4  ;;  %v3674_v7 = vmul.f32 %v1097_v4, %v688_v51  ;;  %v2830_v8 = vpop.f32.mrb[15].mxu1  ;;  %v2402_v41 = vadd.f32 0.0001, %v2398_v3  ;;  %v2376_v51 = vmul.f32 2.0, %v3668_v55 }
 0x224   : > { %v2378_v3 = vmul.f32 2.0, %v3672_v1 }
 0x225   : > { %v2399_v9 = vadd.f32 %v2359_v6, %v2355_v5 }
 0x226   : > { %v1304_v10 = vpop.f32.mrb[16].mxu1 }
 0x227   : > { %v2364_v11 = vsub.f32 %v1304_v10, %v2352_v53  ;;  %v2853_v12 = vpop.f32.mrb[17].mxu1  ;;  %v2403_v52 = vadd.f32 0.0001, %v2399_v9 }
 0x22a   : > { %v1374_v13 = vpop.f32.mrb[18].mxu1 }
 0x22b   : > { %v2365_v14 = vsub.f32 %v1374_v13, %v2353_v44  ;;  %v2860_v15 = vpop.f32.mrb[19].mxu1  ;;  %v2380_v44 = vadd.f32 0.0001, %v2376_v51  ;;  %v2382_v13 = vadd.f32 0.0001, %v2378_v3 }
 0x22e   : > { %v1444_v16 = vpop.f32.mrb[20].mxu1 }
 0x22f   : > { %v2366_v17 = vsub.f32 %v1444_v16, %v2354_v63  ;;  %v2867_v18 = vpop.f32.mrb[21].mxu1 }
 0x232   : > { %v1514_v19 = vpop.f32.mrb[22].mxu1 }
 0x233   : > { %v2367_v20 = vsub.f32 %v1514_v19, %v2355_v5  ;;  %v2874_v21 = vpop.f32.mrb[23].mxu1 }
 0x236   : > { %v1721_v22 = vpop.f32.mrb[24].mxu1 }
 0x237   : > { %v2368_v23 = vsub.f32 %v1721_v22, %v2356_v54  ;;  %v2897_v24 = vpop.f32.mrb[25].mxu1 }
 0x239   : > { %v2404_v25 = vadd.f32 %v2368_v23, %v2364_v11 }
 0x23a   : > { %v1791_v26 = vpop.f32.mrb[26].mxu1 }
 0x23b   : > { %v2408_v28 = vadd.f32 0.0009, %v2404_v25  ;;  %v2369_v29 = vsub.f32 %v1791_v26, %v2357_v59  ;;  %v2904_v30 = vpop.f32.mrb[27].mxu1  ;;  %v2377_v59 = vmul.f32 2.0, %v3670_v60 }
 0x23d   : > { %v2412_v31 = vmul.f32 %v2408_v28, %v2400_v27  ;;  %v2405_v32 = vadd.f32 %v2369_v29, %v2365_v14  ;;  %v2379_v14 = vmul.f32 2.0, %v3674_v7 }
 0x23e   : > { %v1861_v33 = vpop.f32.mrb[28].mxu1 }
 0x23f   : > { %v2409_v35 = vadd.f32 0.0009, %v2405_v32  ;;  %v2370_v36 = vsub.f32 %v1861_v33, %v2358_v0  ;;  %v2911_v37 = vpop.f32.mrb[29].mxu1  ;;  %3101 = vrcp.f32 %v2412_v31  ;;  %v2383_v24 = vadd.f32 0.0001, %v2379_v14 }
 0x241   : > { %v2413_v38 = vmul.f32 %v2409_v35, %v2401_v34  ;;  %v2406_v39 = vadd.f32 %v2370_v36, %v2366_v17 }
 0x242   : > { %v1931_v40 = vpop.f32.mrb[30].mxu1 }
 0x243   : > { %v2410_v42 = vadd.f32 0.0009, %v2406_v39  ;;  %v2371_v45 = vsub.f32 %v1931_v40, %v2359_v6  ;;  %v2918_v46 = vpop.f32.mrb[31].mxu1  ;;  %3103 = vrcp.f32 %v2413_v38 }
 0x245   : > { %v2414_v47 = vmul.f32 %v2410_v42, %v2402_v41  ;;  %v2407_v48 = vadd.f32 %v2371_v45, %v2367_v20 }
 0x246   : > { %v2138_v50 = vpop.f32.mrb[32].mxu1 }
 0x247   : > { %v2411_v43 = vadd.f32 0.0009, %v2407_v48  ;;  %v2372_v53 = vsub.f32 %v2138_v50, %v3668_v55  ;;  %v2941_v54 = vpop.f32.mrb[33].mxu1  ;;  %3105 = vrcp.f32 %v2414_v47  ;;  %v2381_v55 = vadd.f32 0.0001, %v2377_v59 }
 0x249   : > { %v2415_v56 = vmul.f32 %v2411_v43, %v2403_v52  ;;  %v2384_v57 = vmul.f32 2.0, %v2372_v53  ;;  %v3102_v2 = vpop.eup %3101 }
 0x24a   : > { %v2208_v58 = vpop.f32.mrb[34].mxu1 }
 0x24b   : > { %v2388_v49 = vadd.f32 0.0009, %v2384_v57  ;;  %v2373_v61 = vsub.f32 %v2208_v58, %v3670_v60  ;;  %v2948_v62 = vpop.f32.mrb[35].mxu1  ;;  %3107 = vrcp.f32 %v2415_v56 }
 0x24d   : > { %v2392_v63 = vmul.f32 %v2388_v49, %v2380_v44  ;;  %v2385_v0 = vmul.f32 2.0, %v2373_v61  ;;  %v3104_v12 = vpop.eup %3103 }
 0x24e   : > { %v2278_v4 = vpop.f32.mrb[36].mxu1 }
 0x24f   : > { %v2420_v5 = vmul.f32 %v3102_v2, %v2392_v63  ;;  %v2389_v6 = vadd.f32 0.0009, %v2385_v0  ;;  %v2374_v8 = vsub.f32 %v2278_v4, %v3672_v1  ;;  %v2955_v9 = vpop.f32.mrb[37].mxu1 }
 0x251   : > { %v2393_v10 = vmul.f32 %v2389_v6, %v2381_v55  ;;  %v2386_v11 = vmul.f32 2.0, %v2374_v8  ;;  %v2425_v21 = vsel %vm2424_vm2, %v2420_v5, 0.0  ;;  %v3106_v22 = vpop.eup %3105 }
 0x252   : > { %v2348_v60 = vpop.f32.mrb[38].mxu1 }
 0x253   : > { %v2421_v15 = vmul.f32 %v3104_v12, %v2393_v10  ;;  %v2390_v16 = vadd.f32 0.0009, %v2386_v11  ;;  %v2375_v17 = vsub.f32 %v2348_v60, %v3674_v7  ;;  %v2962_v18 = vpop.f32.mrb[39].mxu1 }
 0x255   : > { %v2394_v19 = vmul.f32 %v2390_v16, %v2382_v13  ;;  %v2387_v20 = vmul.f32 2.0, %v2375_v17  ;;  %v2426_v1 = vsel %vm2424_vm2, %v2421_v15, 0.0  ;;  %v3108_v29 = vpop.eup %3107 }
 0x256   : > { %v2427_v23 = vadd.f32 %v2426_v1, %v2425_v21 }
 0x257   : > { %v2391_v25 = vadd.f32 0.0009, %v2387_v20  ;;  %v2422_v26 = vmul.f32 %v3106_v22, %v2394_v19 }
 0x259   : > { %v2395_v27 = vmul.f32 %v2391_v25, %v2383_v24  ;;  %v2428_v28 = vsel %vm2424_vm2, %v2422_v26, 0.0 }
 0x25a   : > { %v2429_v30 = vadd.f32 %v2428_v28, %v2427_v23 }
 0x25b   : > { %v2423_v7 = vmul.f32 %v3108_v29, %v2395_v27 }
 0x25d   : > { %v2430_v31 = vsel %vm2424_vm2, %v2423_v7, 0.0 }
 0x25e   : > { %v2431_v32 = vadd.f32 %v2430_v31, %v2429_v30 }
 0x260   : > { %2432 = vadd.xlane.f32.xlu0 %v2431_v32 }
 0x2ed   : > { %v2433_v33 = vpop.xlane.xlu0 %2432 }
 0x2ee   : > { %v2434_v34 = vrot.slane %v2433_v33, 4 }
 0x2f0   : > { %v2435_v35 = vadd.f32 %v2434_v34, %v2433_v33 }
 0x2f2   : > { %v2436_v36 = vrot.slane %v2435_v35, 2 }
 0x2f4   : > { %v2437_v37 = vadd.f32 %v2436_v36, %v2435_v35 }
 0x2f6   : > { %v2438_v38 = vrot.slane %v2437_v37, 1 }
 0x2f8   : > { %v2439_v39 = vadd.f32 %v2438_v38, %v2437_v37 }
 0x2fa   : > { %3043 = vpush %v2439_v39 }
 0x32b   : > { %s3044_s14 = spop %3043 }
 0x32c   : > { %v2441_v40 = vstv %s3044_s14 }
 0x32d   : > { %2442 = vst [vmem:[%s257_s5] sm:$0xff] %v2441_v40 }
 0x32e   : > { %3182 = shalt.err (!%p3179_p11)
}
 0x32f   : > { %s3183_s10 = scalar_lea.hbm %s3695_s11, 128  ;;  %s3187_s26 = scalar_lea.hbm %s3741_s4, 256 }
 0x330   : > { %p3184_p3 = scmp.ne.s32.totalorder %s3695_s11, %s3183_s10  ;;  %p3188_p2 = scmp.lt.u32.totalorder %s3695_s11, %s3741_s4 }
 0x331   : > { %p3189_p4 = scmp.lt.u32.totalorder %s3187_s26, %s3183_s10  ;;  %p3191_p13 = scmp.lt.u32.totalorder %s3183_s10, %s3695_s11 }
 0x332   : > { %p3185_p8 = pnand %p3184_p3, %p3751_p1 }
 0x333   : > { %p3190_p6 = por %p3189_p4, %p3188_p2 }
 0x334   : > { %p3186_p0 = pneg %p3185_p8 }
 0x335   : > { %p3192_p12 = por %p3191_p13, %p3190_p6 }
 0x337   : > { %p3193_p10 = pnand %p3192_p12, %p3186_p0 }
 0x339   : > { %3196 = shalt.err (!%p3193_p10)
}
 0x33a   : > { %3049 = dma.vmem_to_hbm [thread:$0]  (%p3751_p1), %s3690_s7, 128, %s3695_s11, %s2444_s29  }
 0x33b PF: > { %s2469_s5 = sand.u32 1, %s3227_s15   ;;  %p3752_p5 = scmp.ne.s32.totalorder %s3747_s28, 0 }
 0x33c   : > { %p3753_p7 = scmp.ge.s32.totalorder %s3239_s18, 2  ;;  %s2470_s12 = scalar_lea.sflag [#allocation4], %s2469_s5 }
 0x33e   : > { %p3059_p9 = pnand %p3753_p7, %p3752_p5 }
 0x340   : > { %3222 = dma.done.wait (!%p3059_p9), %s2470_s12, 128  }
 0x341   : > { %3224 = vsyncadd (!%p3059_p9), %s2470_s12, 4294967168  ;;  %p20_p11 = scmp.ge.s32.totalorder %s3299_s21, 4   ;;  %s3754_s15 = smov %s3231_s16 }
 0x342   : > { %s3755_s16 = smov %s3235_s17  ;;  %s3756_s17 = smov %s3311_s24 }
 0x343   : > { %s3757_s18 = smov %s3299_s21  ;;  %22 = sbr.rel (!%p20_p11) target bundleno = 7 (0x7), region = 94 }
 0x34a   :  { %2475 = vsyncpa [#allocation3], 1 }
 0x34b   :  { %2477 = vsyncpa [#allocation3 + $0x1], 1 }
 0x34c   :  { %2478 = vsyncpa [#allocation6], 1 }
 0x34d   :  { %2480 = vsyncpa [#allocation6 + $0x1], 1 }
 0x34e   :  { %2481 = vsyncpa [#allocation4], 1 }
 0x34f   :  { %2483 = vsyncpa [#allocation4 + $0x1], 1 }

</bundles_post_ra>
